<compile_context>
chip_gen: v6e
topology: v6e:2x2x1
jax: 0.10.0
libtpu: 0.0.40
codegen_flags: <defaults>
</compile_context>

<pallas_src>
import jax
import jax.numpy as jnp
from jax.experimental import pallas as pl
from jax.experimental.pallas import tpu as pltpu

BN_EPS = 1e-5
LANE = 128


def _round_up(n, m):
    return ((n + m - 1) // m) * m


def _silu(x):
    return x * jax.nn.sigmoid(x)


# ----------------------------------------------------------------------------
# Kernel
# ----------------------------------------------------------------------------
def survival_head_kernel(ecg_ref, txt_ref, tab_ref, w_in_ref, slab_ref,
                         w1_ref, w2_ref, out_ref):
    f32 = jnp.float32
    cdt = w_in_ref.dtype                  # compute dtype fed to the MXU
    d_ecg = ecg_ref.shape[1]
    d_txt = txt_ref.shape[1]
    d_tab = tab_ref.shape[1]
    p3h = w_in_ref.shape[1]               # padded 3*H (lane-dense, 128)
    h = w1_ref.shape[1]                   # hidden (un-padded, e.g. 32)
    nb_pad = w2_ref.shape[1]              # padded num_bins (lane-dense, 128)
    batch = ecg_ref.shape[0]

    # --- fused branch projections -------------------------------------------
    # Single packed block-diagonal weight (one DMA); evaluated as three
    # K-slice partial dots so the features never need to be concatenated.
    # z[:, 0:H] = ecg branch, z[:, H:2H] = text branch, z[:, 2H:3H] = tab branch.
    z = jnp.dot(ecg_ref[...].astype(cdt), w_in_ref[0:d_ecg, :],
                preferred_element_type=f32)
    z = z + jnp.dot(txt_ref[...].astype(cdt),
                    w_in_ref[d_ecg:d_ecg + d_txt, :],
                    preferred_element_type=f32)
    z = z + jnp.dot(tab_ref[...].astype(cdt),
                    w_in_ref[d_ecg + d_txt:d_ecg + d_txt + d_tab, :],
                    preferred_element_type=f32)
    z = z + slab_ref[0:1, :p3h]           # packed biases (b_ecg | b_txt | b_tab)

    # --- BatchNorm1d (training-mode batch stats) on the text lanes only ------
    # Two-pass variance (better conditioned than E[x^2]-mu^2); mask row
    # selects lanes H:2H.
    inv_n = 1.0 / batch
    mu = jnp.sum(z, axis=0, keepdims=True) * inv_n
    zc = z - mu
    var = jnp.sum(zc * zc, axis=0, keepdims=True) * inv_n
    inv_std = jax.lax.rsqrt(var + BN_EPS)

    gamma = slab_ref[1:2, :p3h]           # bn gamma on text lanes, 0 elsewhere
    beta = slab_ref[2:3, :p3h]            # bn beta  on text lanes, 0 elsewhere
    mask = slab_ref[3:4, :p3h]            # 1.0 on text lanes, 0 elsewhere
    scale = mask * (inv_std * gamma) + (1.0 - mask)
    z = (z - mask * mu) * scale + beta

    # --- SiLU -> packed [B, 3H_pad] embedding (pad lanes stay exactly 0) -----
    emb = _silu(z)

    # --- fusion layer 1: single dot against packed [3H_pad, H] ---------------
    h1 = jnp.dot(emb.astype(cdt), w1_ref[...], preferred_element_type=f32)
    h1 = _silu(h1 + slab_ref[4:5, :h])

    # --- fusion layer 2: lane-dense padded output store ----------------------
    out_ref[...] = (
        jnp.dot(h1.astype(cdt), w2_ref[...], preferred_element_type=f32)
        + slab_ref[5:6, :nb_pad]
    )


# ----------------------------------------------------------------------------
# Parameter packing (done once, outside the hot path)
# ----------------------------------------------------------------------------
def pack_params(params, ecg_dim, text_dim, tab_dim, hidden, num_bins,
                param_dtype=jnp.bfloat16):
    H = hidden
    d_total = ecg_dim + text_dim + tab_dim
    p3h = _round_up(3 * H, LANE)          # keep z lane-dense at 128
    nb_pad = _round_up(num_bins, LANE)    # keep output store lane-dense
    slab_w = max(p3h, nb_pad)

    # The kernel slices w_in along its sublane (row) axis at the branch
    # boundaries; those offsets must be sublane-tile aligned.
    tile = 16 if jnp.dtype(param_dtype).itemsize == 2 else 8
    for off in (ecg_dim, ecg_dim + text_dim, d_total):
        if off % tile != 0:
            raise ValueError(
                f"branch boundary {off} not aligned to sublane tile {tile}")

    # Packed block-diagonal input projection [d_total, p3h] (no zero rows).
    w_in = jnp.zeros((d_total, p3h), jnp.float32)
    w_in = w_in.at[0:ecg_dim, 0:H].set(params["w_ecg"])
    w_in = w_in.at[ecg_dim:ecg_dim + text_dim, H:2 * H].set(params["w_txt"])
    w_in = w_in.at[ecg_dim + text_dim:d_total, 2 * H:3 * H].set(params["w_tab"])

    # Fusion weights: only the lane-dense dims are padded to 128.
    w1 = jnp.zeros((p3h, H), jnp.float32).at[0:3 * H, :].set(params["w_fuse1"])
    w2 = jnp.zeros((H, nb_pad), jnp.float32).at[:, 0:num_bins].set(params["w_fuse2"])

    # Single bias / BN slab (f32): one DMA for all small per-lane parameters.
    slab = jnp.zeros((8, slab_w), jnp.float32)
    slab = slab.at[0, 0:H].set(params["b_ecg"][0])
    slab = slab.at[0, H:2 * H].set(params["b_txt"][0])
    slab = slab.at[0, 2 * H:3 * H].set(params["b_tab"][0])
    slab = slab.at[1, H:2 * H].set(params["bn_gamma"][0])
    slab = slab.at[2, H:2 * H].set(params["bn_beta"][0])
    slab = slab.at[3, H:2 * H].set(1.0)                    # BN lane mask
    slab = slab.at[4, 0:H].set(params["b_fuse1"][0])
    slab = slab.at[5, 0:num_bins].set(params["b_fuse2"][0])

    return {
        "w_in": w_in.astype(param_dtype),
        "w_fuse1": w1.astype(param_dtype),
        "w_fuse2": w2.astype(param_dtype),
        "slab": slab,                                      # keep f32
        "num_bins": num_bins,
    }


# ----------------------------------------------------------------------------
# Wrapper
# ----------------------------------------------------------------------------
def survival_head(ecg_feat, text_feat, tab_feat, packed):
    """Fused head.  Features are passed in their native (f32) dtype; no
    concat / pad / cast XLA ops are emitted before the pallas_call.

    Returns PADDED lane-dense logits [B, nb_pad]; downstream consumers slice
    [:, :packed['num_bins']] (or fuse the slice into the next op).
    """
    B = ecg_feat.shape[0]
    w_in = packed["w_in"]
    w1 = packed["w_fuse1"]
    w2 = packed["w_fuse2"]
    slab = packed["slab"]
    d_total, p3h = w_in.shape
    H = w1.shape[1]
    nb_pad = w2.shape[1]
    w_item = jnp.dtype(w_in.dtype).itemsize

    # Advisory cost so XLA overlaps this tiny call with the backbone compute.
    flops = 2 * B * (d_total * p3h + p3h * H + H * nb_pad)
    transcendentals = B * (p3h + H) + p3h                  # sigmoids + rsqrt
    bytes_accessed = (
        (ecg_feat.size + text_feat.size + tab_feat.size) * ecg_feat.dtype.itemsize
        + (w_in.size + w1.size + w2.size) * w_item
        + slab.size * 4
        + B * nb_pad * 4
    )
    cost = pl.CostEstimate(flops=flops, transcendentals=transcendentals,
                           bytes_accessed=bytes_accessed)

    vmem = pl.BlockSpec(memory_space=pltpu.MemorySpace.VMEM)
    return pl.pallas_call(
        survival_head_kernel,
        out_shape=jax.ShapeDtypeStruct((B, nb_pad), jnp.float32),
        in_specs=[vmem] * 7,
        out_specs=vmem,
        cost_estimate=cost,
    )(ecg_feat, text_feat, tab_feat, w_in, slab, w1, w2)


# ----------------------------------------------------------------------------
# Init + pure-JAX reference (module semantics)
# ----------------------------------------------------------------------------
def xavier_uniform(key, fan_in, fan_out):
    limit = (6.0 / (fan_in + fan_out)) ** 0.5
    return jax.random.uniform(
        key, (fan_in, fan_out), jnp.float32, minval=-limit, maxval=limit
    )


def init_params(key, ecg_dim, text_dim, tabnet_dim, hidden_dim, num_label_bins):
    ks = jax.random.split(key, 5)
    H = hidden_dim
    return {
        "w_ecg": xavier_uniform(ks[0], ecg_dim, H),
        "b_ecg": jnp.zeros((1, H), jnp.float32),
        "w_txt": xavier_uniform(ks[1], text_dim, H),
        "b_txt": jnp.zeros((1, H), jnp.float32),
        "bn_gamma": jnp.ones((1, H), jnp.float32),
        "bn_beta": jnp.zeros((1, H), jnp.float32),
        "w_tab": xavier_uniform(ks[2], tabnet_dim, H),
        "b_tab": jnp.zeros((1, H), jnp.float32),
        "w_fuse1": xavier_uniform(ks[3], 3 * H, H),
        "b_fuse1": jnp.zeros((1, H), jnp.float32),
        "w_fuse2": xavier_uniform(ks[4], H, num_label_bins),
        "b_fuse2": jnp.zeros((1, num_label_bins), jnp.float32),
    }


def reference_head(ecg_feat, text_feat, tab_feat, params):
    """Pure-JAX reference of the same forward pass (for sanity checking)."""
    silu = lambda x: x * jax.nn.sigmoid(x)
    e = silu(ecg_feat @ params["w_ecg"] + params["b_ecg"])
    t = text_feat @ params["w_txt"] + params["b_txt"]
    mu = t.mean(0, keepdims=True)
    var = ((t - mu) ** 2).mean(0, keepdims=True)
    t = (t - mu) / jnp.sqrt(var + BN_EPS)
    t = silu(t * params["bn_gamma"] + params["bn_beta"])
    tb = silu(tab_feat @ params["w_tab"] + params["b_tab"])
    c = jnp.concatenate([e, t, tb], axis=-1)
    h = silu(c @ params["w_fuse1"] + params["b_fuse1"])
    return h @ params["w_fuse2"] + params["b_fuse2"]


# ----------------------------------------------------------------------------
if __name__ == "__main__":
    # Small, module-consistent shapes:
    #   ecg proj.in_features = 32 -> ecg_dim = 2 * 32 = 64
    #   text: 3 segments x 64-dim CLS vectors -> text_dim = 192
    #   tabnet_dim = 32, hidden_dim = 32, num_label_bins = 8
    B = 8
    ECG_DIM, TEXT_DIM, TAB_DIM, HIDDEN, NUM_BINS = 64, 192, 32, 32, 8

    key = jax.random.PRNGKey(0)
    k_ecg, k_txt, k_tab, k_par = jax.random.split(key, 4)

    # TODO(synk): the pretrained ECG / T5 / TabNet backbones are external
    # checkpoints; their outputs are modeled here as random feature tensors.
    ecg_feat = jax.random.normal(k_ecg, (B, ECG_DIM), jnp.float32)
    text_feat = jax.random.normal(k_txt, (B, TEXT_DIM), jnp.float32)
    tab_feat = jax.random.normal(k_tab, (B, TAB_DIM), jnp.float32)

    params = init_params(k_par, ECG_DIM, TEXT_DIM, TAB_DIM, HIDDEN, NUM_BINS)
    ref = reference_head(ecg_feat, text_feat, tab_feat, params)

    # Default path: bf16 weights, f32 features, f32 accumulation.
    packed_bf16 = pack_params(params, ECG_DIM, TEXT_DIM, TAB_DIM, HIDDEN,
                              NUM_BINS)                     # bf16 default
    logits_pad = jax.block_until_ready(
        survival_head(ecg_feat, text_feat, tab_feat, packed_bf16))
    assert logits_pad.shape[0] == B and logits_pad.shape[1] >= NUM_BINS
    logits_bf16 = logits_pad[:, :NUM_BINS]
    assert logits_bf16.shape == (B, NUM_BINS)
    assert jnp.allclose(logits_bf16, ref, atol=5e-2, rtol=5e-2)

    # f32-weight path: exact match against the reference forward pass.
    packed_f32 = pack_params(params, ECG_DIM, TEXT_DIM, TAB_DIM, HIDDEN,
                             NUM_BINS, jnp.float32)
    logits_f32 = jax.block_until_ready(
        survival_head(ecg_feat, text_feat, tab_feat, packed_f32))[:, :NUM_BINS]
    assert logits_f32.shape == (B, NUM_BINS)
    assert jnp.allclose(logits_f32, ref, atol=1e-4, rtol=1e-4)

    print("KERNEL_OK")
</pallas_src>

<mosaic_0001>
module attributes {stable_mosaic.version = 11 : i64} {
  func.func @survival_head_kernel(%arg0: memref<8x64xf32, #tpu.memory_space<vmem>>, %arg1: memref<8x192xf32, #tpu.memory_space<vmem>>, %arg2: memref<8x32xf32, #tpu.memory_space<vmem>>, %arg3: memref<288x128xbf16, #tpu.memory_space<vmem>>, %arg4: memref<8x128xf32, #tpu.memory_space<vmem>>, %arg5: memref<128x32xbf16, #tpu.memory_space<vmem>>, %arg6: memref<32x128xbf16, #tpu.memory_space<vmem>>, %arg7: memref<8x128xf32, #tpu.memory_space<vmem>>) attributes {dimension_semantics = [], scalar_prefetch = 0 : i64, scratch_operands = 0 : i64, tpu.core_type = #tpu.core_type<tc>} {
    %c0 = arith.constant 0 : index
    %c0_0 = arith.constant 0 : index
    %0 = vector.load %arg0[%c0, %c0_0] : memref<8x64xf32, #tpu.memory_space<vmem>>, vector<8x64xf32>
    %1 = arith.truncf %0 : vector<8x64xf32> to vector<8x64xbf16>
    %c0_1 = arith.constant 0 : index
    %c0_2 = arith.constant 0 : index
    %2 = vector.load %arg3[%c0_1, %c0_2] : memref<288x128xbf16, #tpu.memory_space<vmem>>, vector<64x128xbf16>
    %cst = arith.constant dense<0.000000e+00> : vector<8x128xf32>
    %3 = tpu.matmul %1, %2, %cst {dimension_numbers = #tpu.dot_dimension_numbers<[1], [0], [0], [1], [0, 0, 1, 1], [], []>} : vector<8x64xbf16>, vector<64x128xbf16>, vector<8x128xf32> -> vector<8x128xf32>
    %c0_3 = arith.constant 0 : index
    %c0_4 = arith.constant 0 : index
    %4 = vector.load %arg1[%c0_3, %c0_4] : memref<8x192xf32, #tpu.memory_space<vmem>>, vector<8x192xf32>
    %5 = arith.truncf %4 : vector<8x192xf32> to vector<8x192xbf16>
    %c64 = arith.constant 64 : index
    %c0_5 = arith.constant 0 : index
    %6 = vector.load %arg3[%c64, %c0_5] : memref<288x128xbf16, #tpu.memory_space<vmem>>, vector<192x128xbf16>
    %cst_6 = arith.constant dense<0.000000e+00> : vector<8x128xf32>
    %7 = tpu.matmul %5, %6, %cst_6 {dimension_numbers = #tpu.dot_dimension_numbers<[1], [0], [0], [1], [0, 0, 1, 1], [], []>} : vector<8x192xbf16>, vector<192x128xbf16>, vector<8x128xf32> -> vector<8x128xf32>
    %8 = arith.addf %3, %7 : vector<8x128xf32>
    %c0_7 = arith.constant 0 : index
    %c0_8 = arith.constant 0 : index
    %9 = vector.load %arg2[%c0_7, %c0_8] : memref<8x32xf32, #tpu.memory_space<vmem>>, vector<8x32xf32>
    %10 = arith.truncf %9 : vector<8x32xf32> to vector<8x32xbf16>
    %c256 = arith.constant 256 : index
    %c0_9 = arith.constant 0 : index
    %11 = vector.load %arg3[%c256, %c0_9] : memref<288x128xbf16, #tpu.memory_space<vmem>>, vector<32x128xbf16>
    %cst_10 = arith.constant dense<0.000000e+00> : vector<8x128xf32>
    %12 = tpu.matmul %10, %11, %cst_10 {dimension_numbers = #tpu.dot_dimension_numbers<[1], [0], [0], [1], [0, 0, 1, 1], [], []>} : vector<8x32xbf16>, vector<32x128xbf16>, vector<8x128xf32> -> vector<8x128xf32>
    %13 = arith.addf %8, %12 : vector<8x128xf32>
    %c0_11 = arith.constant 0 : index
    %c0_12 = arith.constant 0 : index
    %14 = vector.load %arg4[%c0_11, %c0_12] : memref<8x128xf32, #tpu.memory_space<vmem>>, vector<1x128xf32>
    %15 = vector.broadcast %14 : vector<1x128xf32> to vector<8x128xf32>
    %16 = arith.addf %13, %15 : vector<8x128xf32>
    %cst_13 = arith.constant dense<0.000000e+00> : vector<128xf32>
    %17 = vector.multi_reduction <add>, %16, %cst_13 [0] : vector<8x128xf32> to vector<128xf32>
    %18 = vector.shape_cast %17 : vector<128xf32> to vector<1x128xf32>
    %cst_14 = arith.constant 1.250000e-01 : f32
    %19 = vector.broadcast %cst_14 : f32 to vector<1x128xf32>
    %20 = arith.mulf %18, %19 : vector<1x128xf32>
    %21 = vector.broadcast %20 : vector<1x128xf32> to vector<8x128xf32>
    %22 = arith.subf %16, %21 : vector<8x128xf32>
    %23 = arith.mulf %22, %22 : vector<8x128xf32>
    %cst_15 = arith.constant dense<0.000000e+00> : vector<128xf32>
    %24 = vector.multi_reduction <add>, %23, %cst_15 [0] : vector<8x128xf32> to vector<128xf32>
    %25 = vector.shape_cast %24 : vector<128xf32> to vector<1x128xf32>
    %cst_16 = arith.constant 1.250000e-01 : f32
    %26 = vector.broadcast %cst_16 : f32 to vector<1x128xf32>
    %27 = arith.mulf %25, %26 : vector<1x128xf32>
    %cst_17 = arith.constant 9.99999974E-6 : f32
    %28 = vector.broadcast %cst_17 : f32 to vector<1x128xf32>
    %29 = arith.addf %27, %28 : vector<1x128xf32>
    %30 = math.rsqrt %29 : vector<1x128xf32>
    %c1 = arith.constant 1 : index
    %c0_18 = arith.constant 0 : index
    %31 = vector.load %arg4[%c1, %c0_18] : memref<8x128xf32, #tpu.memory_space<vmem>>, vector<1x128xf32>
    %c2 = arith.constant 2 : index
    %c0_19 = arith.constant 0 : index
    %32 = vector.load %arg4[%c2, %c0_19] : memref<8x128xf32, #tpu.memory_space<vmem>>, vector<1x128xf32>
    %c3 = arith.constant 3 : index
    %c0_20 = arith.constant 0 : index
    %33 = vector.load %arg4[%c3, %c0_20] : memref<8x128xf32, #tpu.memory_space<vmem>>, vector<1x128xf32>
    %34 = arith.mulf %30, %31 : vector<1x128xf32>
    %35 = arith.mulf %33, %34 : vector<1x128xf32>
    %cst_21 = arith.constant 1.000000e+00 : f32
    %36 = vector.broadcast %cst_21 : f32 to vector<1x128xf32>
    %37 = arith.subf %36, %33 : vector<1x128xf32>
    %38 = arith.addf %35, %37 : vector<1x128xf32>
    %39 = arith.mulf %33, %20 : vector<1x128xf32>
    %40 = vector.broadcast %39 : vector<1x128xf32> to vector<8x128xf32>
    %41 = arith.subf %16, %40 : vector<8x128xf32>
    %42 = vector.broadcast %38 : vector<1x128xf32> to vector<8x128xf32>
    %43 = arith.mulf %41, %42 : vector<8x128xf32>
    %44 = vector.broadcast %32 : vector<1x128xf32> to vector<8x128xf32>
    %45 = arith.addf %43, %44 : vector<8x128xf32>
    %46 = arith.negf %45 : vector<8x128xf32>
    %47 = math.exp %46 : vector<8x128xf32>
    %cst_22 = arith.constant 1.000000e+00 : f32
    %48 = vector.broadcast %cst_22 : f32 to vector<8x128xf32>
    %49 = arith.addf %48, %47 : vector<8x128xf32>
    %50 = arith.divf %48, %49 : vector<8x128xf32>
    %51 = arith.mulf %45, %50 : vector<8x128xf32>
    %52 = arith.truncf %51 : vector<8x128xf32> to vector<8x128xbf16>
    %c0_23 = arith.constant 0 : index
    %c0_24 = arith.constant 0 : index
    %53 = vector.load %arg5[%c0_23, %c0_24] : memref<128x32xbf16, #tpu.memory_space<vmem>>, vector<128x32xbf16>
    %cst_25 = arith.constant dense<0.000000e+00> : vector<8x32xf32>
    %54 = tpu.matmul %52, %53, %cst_25 {dimension_numbers = #tpu.dot_dimension_numbers<[1], [0], [0], [1], [0, 0, 1, 1], [], []>} : vector<8x128xbf16>, vector<128x32xbf16>, vector<8x32xf32> -> vector<8x32xf32>
    %c4 = arith.constant 4 : index
    %c0_26 = arith.constant 0 : index
    %55 = vector.load %arg4[%c4, %c0_26] : memref<8x128xf32, #tpu.memory_space<vmem>>, vector<1x32xf32>
    %56 = vector.broadcast %55 : vector<1x32xf32> to vector<8x32xf32>
    %57 = arith.addf %54, %56 : vector<8x32xf32>
    %58 = arith.negf %57 : vector<8x32xf32>
    %59 = math.exp %58 : vector<8x32xf32>
    %cst_27 = arith.constant 1.000000e+00 : f32
    %60 = vector.broadcast %cst_27 : f32 to vector<8x32xf32>
    %61 = arith.addf %60, %59 : vector<8x32xf32>
    %62 = arith.divf %60, %61 : vector<8x32xf32>
    %63 = arith.mulf %57, %62 : vector<8x32xf32>
    %64 = arith.truncf %63 : vector<8x32xf32> to vector<8x32xbf16>
    %c0_28 = arith.constant 0 : index
    %c0_29 = arith.constant 0 : index
    %65 = vector.load %arg6[%c0_28, %c0_29] : memref<32x128xbf16, #tpu.memory_space<vmem>>, vector<32x128xbf16>
    %cst_30 = arith.constant dense<0.000000e+00> : vector<8x128xf32>
    %66 = tpu.matmul %64, %65, %cst_30 {dimension_numbers = #tpu.dot_dimension_numbers<[1], [0], [0], [1], [0, 0, 1, 1], [], []>} : vector<8x32xbf16>, vector<32x128xbf16>, vector<8x128xf32> -> vector<8x128xf32>
    %c5 = arith.constant 5 : index
    %c0_31 = arith.constant 0 : index
    %67 = vector.load %arg4[%c5, %c0_31] : memref<8x128xf32, #tpu.memory_space<vmem>>, vector<1x128xf32>
    %68 = vector.broadcast %67 : vector<1x128xf32> to vector<8x128xf32>
    %69 = arith.addf %66, %68 : vector<8x128xf32>
    %c0_32 = arith.constant 0 : index
    %c0_33 = arith.constant 0 : index
    %70 = vector.load %arg7[%c0_32, %c0_33] : memref<8x128xf32, #tpu.memory_space<vmem>>, vector<8x128xf32>
    tpu.vector_store %arg7[%c0_32, %c0_33], %69 {strides = array<i32>} : memref<8x128xf32, #tpu.memory_space<vmem>>, vector<8x128xf32>,
    return
  }
}

</mosaic_0001>

<bundles_post_ra>
// kernel: tpu_custom_call.1
= control target key start
LH: loop header
LB: loop body
LE: loop exit
PB: predicated region body
PF: predicated region fallthrough
CT: control target
= control target key end

     0   :  { %12 = vsyncpa [#allocation3], 0  ;;  %s924_s0 = inlined_call_operand.vmem [shape: f32[8,64], index: 0, kind: input, shape index: {}]   ;;  %s925_s1 = inlined_call_operand.vmem [shape: f32[8,192], index: 1, kind: input, shape index: {}]   ;;  %s926_s2 = inlined_call_operand.vmem [shape: f32[8,32], index: 2, kind: input, shape index: {}]   ;;  %s927_s3 = inlined_call_operand.hbm [shape: bf16[288,128], index: 3, kind: input, shape index: {}]   ;;  %s928_s4 = inlined_call_operand.vmem [shape: f32[8,128], index: 4, kind: input, shape index: {}]   ;;  %s929_s5 = inlined_call_operand.vmem [shape: bf16[128,32], index: 5, kind: input, shape index: {}]   ;;  %s930_s6 = inlined_call_operand.vmem [shape: bf16[32,128], index: 6, kind: input, shape index: {}]   ;;  %s931_s7 = inlined_call_operand.hbm [shape: f32[8,128], index: 7, kind: output, shape index: {}]  }
   0x1   :  { %13 = vsyncpa [#allocation4], 0  ;;  %s773_s24 = smov [#allocation2]  }
   0x2   :  { %s25_s25 = sshll.u32 %s773_s24, 4  ;;  %s26_s25 = int_to_ptr.vmem [resolvable:$true] %s25_s25 }
   0x3   :  { %s737_s26 = scalar_lea.vmem %s26_s25, 2304  ;;  %p742_p1 = scmp.lt.s32.totalorder %s26_s25, %s26_s25 }
   0x4   :  { %p738_p0 = scmp.ne.s32.totalorder %s26_s25, %s737_s26  ;;  %p743_p2 = scmp.lt.s32.totalorder %s737_s26, %s737_s26 }
   0x6   :  { %p744_p3 = por %p743_p2, %p742_p1 }
   0x8   :  { %p745_p4 = pnand %p744_p3, %p738_p0 }
   0xa   :  { %748 = shalt.err (!%p745_p4)
}
   0xb   :  { %s774_s27 = smov 64   ;;  %s775_s28 = smov 4  }
   0xc   :  { %31 = dma.hbm_to_vmem [thread:$0]  %s927_s3, 2304, %s26_s25, [#allocation3], %s774_s27, %s774_s27, %s775_s28  }
   0xd   :  { %769 = dma.done.wait [#allocation3], 2304  }
   0xe   :  { %770 = vsyncadd [#allocation3], 4294964992  ;;  %v776_v0 = vmov 0   ;;  %v777_v1 = vmov 0.0   ;;  %vm778_vm0 = vmmov 0   ;;  %v691_v2 = vld [vmem:[#allocation2 + $0x58] sm:$0xff]  }
   0xf   :  { %156 = vmatprep.subr.bf16.mxu0 %v776_v0  ;;  %636 = vmatprep.subr.bf16.mxu1 %v777_v1  ;;  %v692_v3 = vld [vmem:[#allocation2 + $0x50] sm:$0xff]   ;;  %v693_v4 = vld [vmem:[#allocation2 + $0x48] sm:$0xff]   ;;  %v697_v5 = vld [vmem:[#allocation2 + $0x18] sm:$0xff]   ;;  %vm152_vm1 = vcmask 523264   ;;  %vm281_vm2 = vcmask 261120   ;;  %s779_s16 = smov [#allocation5]  }
  0x10   :  { %644 = vmatprep.mubr.msk.bf16.mxu1 %vm778_vm0, %v777_v1  ;;  %157 = vmatpush1.bf16.msra.mxu0 %v691_v2  ;;  %v699_v6 = vld [vmem:[#allocation2 + $0x10] sm:$0xff]   ;;  %v694_v7 = vld [vmem:[#allocation2 + $0x40] sm:$0xff]   ;;  %v701_v8 = vld [vmem:[#allocation2 + $0x8] sm:$0xff]  }
  0x11   :  { %158 = vmatprep.subr.bf16.mxu0 %v776_v0  ;;  %637 = vmatpush3.bf16.msra.mxu1 %v697_v5  ;;  %v695_v9 = vld [vmem:[#allocation2 + $0x38] sm:$0xff]   ;;  %v703_v10 = vld [vmem:[#allocation2] sm:$0xff]   ;;  %v696_v12 = vld [vmem:[#allocation2 + $0x30] sm:$0xff]  }
  0x12   :  { %638 = vmatprep.subr.bf16.mxu1 %v777_v1  ;;  %v42_v11 = vld [vmem:[%s924_s0] sm:$0xff]  ;;  %v53_v13 = vld [vmem:[%s925_s1 + $0x8] sm:$0xff]  ;;  %v702_v22 = vld [vmem:[#allocation2 + $0x78] sm:$0xff]  }
  0x13   :  { %v43_v14 = vpack.c.bf16 %v42_v11, %v42_v11  ;;  %v705_v15 = vld [vmem:[#allocation2 + $0x88] sm:$0xff]   ;;  %v55_v16 = vpack.c.bf16 %v53_v13, %v53_v13  ;;  %v707_v18 = vld [vmem:[#allocation2 + $0x80] sm:$0xff]   ;;  %v704_v23 = vld [vmem:[#allocation2 + $0x70] sm:$0xff]  }
  0x14   :  { %159 = vmatpush1.bf16.msra.mxu0 %v692_v3  ;;  %v698_v17 = vld [vmem:[#allocation2 + $0x28] sm:$0xff]   ;;  %v263_v19 = vld [vmem:[%s926_s2] sm:$0xff]  ;;  %v709_v28 = vld [vmem:[%s929_s5 + $0x38] sm:$0xff]  }
  0x15   :  { %160 = vmatprep.subr.bf16.mxu0 %v776_v0  ;;  %639 = vmatpush3.bf16.msra.mxu1 %v699_v6  ;;  %v700_v20 = vld [vmem:[#allocation2 + $0x20] sm:$0xff]   ;;  %v264_v21 = vpack.c.bf16 %v263_v19, %v263_v19  ;;  %v706_v24 = vld [vmem:[#allocation2 + $0x68] sm:$0xff]   ;;  %v710_v29 = vld [vmem:[%s929_s5 + $0x30] sm:$0xff]   ;;  %v358_v6 = vlaneseq }
  0x16   :  { %640 = vmatprep.subr.bf16.mxu1 %v777_v1  ;;  %590 = vmatprep.mubr.msk.bf16.mxu0 %vm152_vm1, %v55_v16  ;;  %v708_v25 = vld [vmem:[#allocation2 + $0x60] sm:$0xff]   ;;  %v711_v30 = vld [vmem:[%s929_s5 + $0x28] sm:$0xff]   ;;  %v713_v32 = vld [vmem:[%s929_s5 + $0x18] sm:$0xff]  }
  0x17   :  { %v52_v26 = vld [vmem:[%s925_s1] sm:$0xff]  ;;  %v714_v33 = vld [vmem:[%s929_s5 + $0x10] sm:$0xff]   ;;  %v715_v34 = vld [vmem:[%s929_s5 + $0x8] sm:$0xff]   ;;  %s569_s1 = sshll.u32 %s779_s16, 4  ;;  %s570_s1 = int_to_ptr.vmem [resolvable:$true] %s569_s1 }
  0x18   :  { %161 = vmatpush1.bf16.msra.mxu0 %v693_v4  ;;  %v54_v27 = vpack.c.bf16 %v52_v26, %v52_v26  ;;  %v712_v31 = vld [vmem:[%s929_s5 + $0x20] sm:$0xff]   ;;  %s749_s17 = scalar_lea.vmem %s570_s1, 128  ;;  %p754_p6 = scmp.lt.s32.totalorder %s570_s1, %s570_s1 }
  0x19   :  { %162 = vmatprep.subr.bf16.mxu0 %v776_v0  ;;  %641 = vmatpush3.bf16.msra.mxu1 %v701_v8  ;;  %v716_v35 = vld [vmem:[%s929_s5] sm:$0xff]   ;;  %p750_p5 = scmp.ne.s32.totalorder %s570_s1, %s749_s17  ;;  %p755_p7 = scmp.lt.s32.totalorder %s749_s17, %s749_s17 }
  0x1a   :  { %642 = vmatprep.subr.bf16.mxu1 %v777_v1  ;;  %v599_v46 = vld [vmem:[%s928_s4] ss:$0 sm:$0xff]  ;;  %v352_v8 = vld [vmem:[%s928_s4 + $0x3] sm:$0x1] }
  0x1b   :  { %p756_p8 = por %p755_p7, %p754_p6 }
  0x1c   :  { %163 = vmatpush1.bf16.msra.mxu0 %v694_v7  ;;  %v359_v7 = vshrl.u32 %v358_v6, 7 }
  0x1d   :  { %164 = vmatprep.subr.bf16.mxu0 %v776_v0  ;;  %643 = vmatpush3.bf16.msra.mxu1 %v703_v10  ;;  %p757_p9 = pnand %p756_p8, %p750_p5 }
  0x1e   :  { %648 = vmatprep.subr.bf16.mxu1 %v777_v1  ;;  %v360_v11 = vsub.s32 0, %v359_v7 }
  0x20   :  { %165 = vmatpush1.bf16.msra.mxu0 %v695_v9  ;;  %645 = vmatmul.mubr.msk.bf16.vlgmr.msra.gmra.mxu1 %vm152_vm1, %v43_v14  ;;  %v350_v9 = vld [vmem:[%s928_s4 + $0x1] sm:$0x1]  ;;  %v355_v14 = vsub.f32 1.0, %v352_v8 }
  0x21   :  { %166 = vmatprep.subr.bf16.mxu0 %v776_v0  ;;  %649 = vmatpush3.bf16.msra.mxu1 %v705_v15 }
  0x22   :  { %652 = vmatprep.mubr.msk.bf16.mxu1 %vm778_vm0, %v777_v1  ;;  %650 = vmatprep.subr.bf16.mxu1 %v777_v1 }
  0x24   :  { %167 = vmatpush1.bf16.msra.mxu0 %v696_v12 }
  0x25   :  { %168 = vmatprep.subr.bf16.mxu0 %v776_v0  ;;  %651 = vmatpush3.bf16.msra.mxu1 %v707_v18 }
  0x26   :  { %656 = vmatprep.subr.bf16.mxu1 %v777_v1 }
  0x28   :  { %169 = vmatpush1.bf16.msra.mxu0 %v698_v17  ;;  %653 = vmatmul.mubr.msk.bf16.vlgmr.msra.gmra.mxu1 %vm281_vm2, %v264_v21 }
  0x29   :  { %170 = vmatprep.subr.bf16.mxu0 %v776_v0  ;;  %672 = vmatprep.mubr.msk.bf16.mxu1 %vm778_vm0, %v777_v1 }
  0x2a   :  { %657 = vmatpush3.bf16.msra.mxu1 %v709_v28 }
  0x2b   :  { %658 = vmatprep.subr.bf16.mxu1 %v777_v1 }
  0x2c   :  { %171 = vmatpush1.bf16.msra.mxu0 %v700_v20  ;;  %v600_v20 = vld [vmem:[%s928_s4 + $0x2] ss:$0 sm:$0xff] }
  0x2d   :  { %180 = vmatprep.subr.bf16.mxu0 %v776_v0 }
  0x2e   :  { %659 = vmatpush3.bf16.msra.mxu1 %v710_v29  ;;  %v717_v29 = vld [vmem:[%s930_s6 + $0x8] sm:$0xff]  }
  0x2f   :  { %660 = vmatprep.subr.bf16.mxu1 %v777_v1 }
  0x30   :  { %181 = vmatpush2.bf16.msra.mxu0 %v702_v22 }
  0x31   :  { %182 = vmatprep.subr.bf16.mxu0 %v776_v0 }
  0x32   :  { %661 = vmatpush3.bf16.msra.mxu1 %v711_v30  ;;  %v718_v30 = vld [vmem:[%s930_s6] sm:$0xff]  }
  0x33   :  { %662 = vmatprep.subr.bf16.mxu1 %v777_v1 }
  0x34   :  { %183 = vmatpush2.bf16.msra.mxu0 %v704_v23 }
  0x35   :  { %184 = vmatprep.subr.bf16.mxu0 %v776_v0 }
  0x36   :  { %663 = vmatpush3.bf16.msra.mxu1 %v712_v31  ;;  %v602_v31 = vld [vmem:[%s928_s4 + $0x4] ss:$0 sm:$0xff] }
  0x37   :  { %664 = vmatprep.subr.bf16.mxu1 %v777_v1 }
  0x38   :  { %185 = vmatpush2.bf16.msra.mxu0 %v706_v24 }
  0x39   :  { %186 = vmatprep.subr.bf16.mxu0 %v776_v0 }
  0x3a   :  { %665 = vmatpush3.bf16.msra.mxu1 %v713_v32 }
  0x3b   :  { %666 = vmatprep.subr.bf16.mxu1 %v777_v1 }
  0x3c   :  { %187 = vmatpush2.bf16.msra.mxu0 %v708_v25 }
  0x3d   :  { %676 = vmatprep.subr.bf16.mxu0 %v777_v1 }
  0x3e   :  { %667 = vmatpush3.bf16.msra.mxu1 %v714_v33 }
  0x3f   :  { %189 = vmatmul.mubr.bf16.vlgmr.msra.gmra.mxu0 %v54_v27  ;;  %668 = vmatprep.subr.bf16.mxu1 %v777_v1 }
  0x40   :  { %680 = vmatprep.mubr.msk.bf16.mxu0 %vm778_vm0, %v777_v1  ;;  %677 = vmatpush3.bf16.msra.mxu0 %v717_v29 }
  0x41   :  { %678 = vmatprep.subr.bf16.mxu0 %v777_v1 }
  0x42   :  { %669 = vmatpush3.bf16.msra.mxu1 %v715_v34 }
  0x43   :  { %670 = vmatprep.subr.bf16.mxu1 %v777_v1 }
  0x44   :  { %679 = vmatpush3.bf16.msra.mxu0 %v718_v30 }
  0x46   :  { %671 = vmatpush3.bf16.msra.mxu1 %v716_v35 }
  0xe0   :  { %v257_v36 = vpop.f32.mrf.mxu1 }
  0xe2   :  { %v646_v37 = vpop.f32.mrf.mxu1 }
  0xe4   :  { %v260_v38 = vpop.f32.mrf.mxu1 }
  0xe6   :  { %v647_v39 = vpop.f32.mrf.mxu1 }
  0xe8   :  { %v319_v40 = vpop.f32.mrf.mxu1 }
  0xea   :  { %v654_v41 = vpop.f32.mrf.mxu1 }
  0xec   :  { %v322_v42 = vpop.f32.mrf.mxu1 }
  0xed   :  { %v612_v42 = vld [vmem:[%s928_s4 + $0x5] ss:$0 sm:$0xff] }
  0xee   :  { %v655_v43 = vpop.f32.mrf.mxu1 }
  0xff   :  { %v190_v44 = vpop.f32.mrf.mxu0 }
 0x100   :  { %v258_v45 = vadd.f32 %v257_v36, %v190_v44 }
 0x101   :  { %v192_v47 = vpop.f32.mrf.mxu0 }
 0x102   :  { %v325_v48 = vadd.f32 %v319_v40, %v258_v45 }
 0x103   :  { %v193_v49 = vpop.f32.mrf.mxu0 }
 0x104   :  { %v331_v50 = vadd.f32 %v599_v46, %v325_v48 }
 0x105   :  { %v194_v51 = vpop.f32.mrf.mxu0 }
 0x106   :  { %v332_v52 = vrot.slane %v331_v50, 4 }
 0x108   :  { %v333_v53 = vadd.f32 %v332_v52, %v331_v50 }
 0x10a   :  { %v334_v54 = vrot.slane %v333_v53, 2 }
 0x10c   :  { %v335_v55 = vadd.f32 %v334_v54, %v333_v53 }
 0x10e   :  { %v336_v56 = vrot.slane %v335_v55, 1 }
 0x110   :  { %v337_v57 = vadd.f32 %v336_v56, %v335_v55 }
 0x112   :  { %v338_v58 = vmul.f32 0.125, %v337_v57 }
 0x114   :  { %v339_v59 = vsub.f32 %v331_v50, %v338_v58  ;;  %v357_v10 = vmul.f32 %v352_v8, %v338_v58 }
 0x116   :  { %v340_v60 = vmul.f32 %v339_v59, %v339_v59  ;;  %v361_v15 = vrot.slane %v357_v10, %v360_v11 }
 0x118   :  { %v341_v61 = vrot.slane %v340_v60, 4  ;;  %v362_v18 = vsub.f32 %v331_v50, %v361_v15 }
 0x11a   :  { %v342_v62 = vadd.f32 %v341_v61, %v340_v60 }
 0x11c   :  { %v343_v63 = vrot.slane %v342_v62, 2 }
 0x11e   :  { %v344_v0 = vadd.f32 %v343_v63, %v342_v62 }
 0x120   :  { %v345_v2 = vrot.slane %v344_v0, 1 }
 0x122   :  { %v346_v3 = vadd.f32 %v345_v2, %v344_v0 }
 0x124   :  { %v347_v4 = vmul.f32 0.125, %v346_v3 }
 0x126   :  { %v348_v5 = vadd.f32 1e-05, %v347_v4 }
 0x128   :  { %719 = vrsqrt.f32 %v348_v5 }
 0x135   :  { %v720_v12 = vpop.eup %719 }
 0x136   :  { %v353_v13 = vmul.f32 %v720_v12, %v350_v9 }
 0x138   :  { %v354_v16 = vmul.f32 %v353_v13, %v352_v8 }
 0x13a   :  { %v356_v17 = vadd.f32 %v355_v14, %v354_v16 }
 0x13c   :  { %v366_v19 = vrot.slane %v356_v17, %v360_v11 }
 0x13e   :  { %v367_v21 = vmul.f32 %v366_v19, %v362_v18 }
 0x140   :  { %v372_v22 = vadd.f32 %v600_v20, %v367_v21 }
 0x142   :  { %v601_v23 = vmul.f32 -1.442695, %v372_v22 }
 0x144   :  { %721 = vpow2.f32 %v601_v23 }
 0x151   :  { %v722_v24 = vpop.eup %721 }
 0x152   :  { %v376_v25 = vadd.f32 1.0, %v722_v24 }
 0x154   :  { %723 = vrcp.f32 %v376_v25 }
 0x161   :  { %v724_v26 = vpop.eup %723 }
 0x162   :  { %v379_v27 = vmul.f32 %v724_v26, %v372_v22 }
 0x164   :  { %v380_v28 = vpack.c.bf16 %v379_v27, %v379_v27 }
 0x166   :  { %673 = vmatmul.mubr.bf16.vlgmr.msra.gmra.mxu1 %v380_v28 }
 0x226   :  { %v484_v32 = vpop.f32.mrf.mxu1 }
 0x227   :  { %v485_v33 = vadd.f32 %v602_v31, %v484_v32 }
 0x228   :  { %v674_v34 = vpop.f32.mrf.mxu1 }
 0x229   :  { %v611_v35 = vmul.f32 -1.442695, %v485_v33 }
 0x22a   :  { %v487_v36 = vpop.f32.mrf.mxu1 }
 0x22b   :  { %725 = vpow2.f32 %v611_v35 }
 0x22c   :  { %v675_v37 = vpop.f32.mrf.mxu1 }
 0x238   :  { %v726_v38 = vpop.eup %725 }
 0x239   :  { %v493_v39 = vadd.f32 1.0, %v726_v38 }
 0x23b   :  { %727 = vrcp.f32 %v493_v39 }
 0x248   :  { %v728_v1 = vpop.eup %727 }
 0x249   :  { %v496_v40 = vmul.f32 %v728_v1, %v485_v33 }
 0x24b   :  { %v497_v41 = vpack.c.bf16 %v496_v40, %v496_v40 }
 0x24d   :  { %681 = vmatmul.mubr.msk.bf16.vlgmr.msra.gmra.mxu0 %vm281_vm2, %v497_v41 }
 0x30d   :  { %v556_v43 = vpop.f32.mrf.mxu0 }
 0x30e   :  { %v557_v44 = vadd.f32 %v612_v42, %v556_v43 }
 0x30f   :  { %v682_v45 = vpop.f32.mrf.mxu0 }
 0x310   :  { %562 = vst [vmem:[#allocation5] sm:$0xff] %v557_v44 }
 0x311   :  { %v559_v46 = vpop.f32.mrf.mxu0 }
 0x312   :  { %760 = shalt.err (!%p757_p9)
}
 0x313   :  { %572 = dma.vmem_to_hbm [thread:$0]  %s570_s1, 128, %s931_s7, [#allocation4]   ;;  %v683_v47 = vpop.f32.mrf.mxu0 }
 0x314   :  { %771 = dma.done.wait [#allocation4], 128  }
 0x315   :  { %772 = vsyncadd [#allocation4], 4294967168 }
 0x316   :  { %576 = vsyncpa [#allocation3], 1 }
 0x317   :  { %577 = vsyncpa [#allocation4], 1 }

</bundles_post_ra>
